<compile_context>
chip_gen: v7x
topology: tpu7x:2x2x1
jax: 0.10.0
libtpu: 0.0.40
codegen_flags: <defaults>
</compile_context>

<pallas_src>
import jax
import jax.numpy as jnp
import numpy as np
from jax.experimental import pallas as pl
from jax.experimental.pallas import tpu as pltpu

SLOWFAST_ALPHA = 4


def _slow_indices(t: int, alpha: int) -> np.ndarray:
    """Replicates torch.linspace(0, t-1, t//alpha).long().

    torch's CPU linspace computes the step in double and evaluates
    start + step*i for the first half / end - step*(steps-1-i) for the second
    half, casts to float32, then .long() truncates toward zero. We mirror that
    arithmetic (and clamp to [0, t-1] so the DMA can never go out of bounds).
    """
    n_slow = t // alpha
    if n_slow <= 0:
        return np.zeros((0,), dtype=np.int32)
    if n_slow == 1:
        return np.zeros((1,), dtype=np.int32)  # single-point linspace == start
    step = float(t - 1) / float(n_slow - 1)     # double, like torch
    half = n_slow // 2
    vals = []
    for i in range(n_slow):
        if i < half:
            v = np.float32(step * i)
        else:
            v = np.float32(float(t - 1) - step * (n_slow - 1 - i))
        vals.append(int(v))                     # trunc toward zero == .long()
    return np.clip(np.array(vals, dtype=np.int32), 0, t - 1)


def _coalesce_runs(idx: np.ndarray):
    """Merge runs of consecutive source indices -> tuple of (src, dst, len)."""
    runs = []
    i, n = 0, int(idx.shape[0])
    while i < n:
        j = i
        while j + 1 < n and int(idx[j + 1]) == int(idx[j]) + 1:
            j += 1
        runs.append((int(idx[i]), i, j - i + 1))
        i = j + 1
    return tuple(runs)


def _make_gather_kernel(runs, n_sems):
    """Builds the HBM->HBM gather kernel for a static run list.

    x_hbm : (C, T, H*W)      raw HBM ref.
    o_hbm : (C, n_slow, H*W) raw HBM ref.
    sems  : (n_sems,) DMA semaphores -> up to n_sems copies in flight.
    Every DMA descriptor is fully static (indices are trace-time constants).
    """
    n_runs = len(runs)

    def kernel(x_hbm, o_hbm, sems):
        def run_copy(r, slot):
            src, dst, ln = runs[r]
            return pltpu.make_async_copy(
                x_hbm.at[:, pl.ds(src, ln), :],
                o_hbm.at[:, pl.ds(dst, ln), :],
                sems.at[slot],
            )

        # Prime up to n_sems copies in flight.
        for r in range(min(n_sems, n_runs)):
            run_copy(r, r % n_sems).start()
        # Retire in order; each completion frees its slot for the next copy,
        # keeping n_sems DMAs in flight until the tail. Each wait descriptor is
        # rebuilt from the SAME slice as its start so byte accounting matches
        # even when runs have different lengths.
        for r in range(n_runs):
            run_copy(r, r % n_sems).wait()
            nxt = r + n_sems
            if nxt < n_runs:
                run_copy(nxt, nxt % n_sems).start()

    return kernel


def pack_pathway(frames: jnp.ndarray, alpha: int = SLOWFAST_ALPHA):
    """Returns [slow_pathway, fast_pathway], matching PackPathway.forward."""
    C, T, H, W = frames.shape
    idx = _slow_indices(T, alpha)
    n_slow = int(idx.shape[0])

    fast = frames  # identity pathway; passed through untouched (zero cost)

    if n_slow == 0:
        # T < alpha -> empty index list, empty slow pathway (no kernel launch).
        return [jnp.zeros((C, 0, H, W), dtype=frames.dtype), fast]

    hw = H * W
    x_flat = frames.reshape(C, T, hw)  # free, contiguous reshape (lane-dense)
    runs = _coalesce_runs(idx)

    # Bytes-in-flight must cover DMA latency x HBM bandwidth: deepen the
    # pipeline for small frames, keep 4 for large (>=512 KiB) f32 frames.
    frame_bytes = C * hw * np.dtype(frames.dtype).itemsize
    depth = 8 if frame_bytes < (512 << 10) else 4
    n_sems = max(1, min(depth, len(runs)))

    slow_flat = pl.pallas_call(
        _make_gather_kernel(runs, n_sems),
        out_shape=jax.ShapeDtypeStruct((C, n_slow, hw), frames.dtype),
        grid_spec=pltpu.PrefetchScalarGridSpec(
            num_scalar_prefetch=0,
            grid=(1,),
            in_specs=[pl.BlockSpec(memory_space=pl.ANY)],   # raw HBM ref
            out_specs=pl.BlockSpec(memory_space=pl.ANY),    # raw HBM ref (DMA-written)
            scratch_shapes=[pltpu.SemaphoreType.DMA((n_sems,))],
        ),
        compiler_params=pltpu.CompilerParams(
            dimension_semantics=("arbitrary",),
        ),
    )(x_flat)

    slow = slow_flat.reshape(C, n_slow, H, W)
    return [slow, fast]


def _check_case(key, C, T, H, W, dtype, alpha):
    frames = jax.random.normal(key, (C, T, H, W), dtype=jnp.float32).astype(dtype)
    slow, fast = pack_pathway(frames, alpha=alpha)
    slow = jax.block_until_ready(slow)
    fast = jax.block_until_ready(fast)

    idx = _slow_indices(T, alpha)
    n_slow = int(idx.shape[0])
    if n_slow:
        ref_slow = jnp.take(frames, jnp.asarray(idx), axis=1)
    else:
        ref_slow = jnp.zeros((C, 0, H, W), dtype=dtype)

    assert slow.shape == (C, n_slow, H, W), (slow.shape, (C, n_slow, H, W))
    assert fast.shape == (C, T, H, W)
    assert bool(jnp.array_equal(slow, ref_slow)), (
        f"slow mismatch C={C} T={T} H={H} W={W} alpha={alpha}")
    assert bool(jnp.array_equal(fast, frames))


if __name__ == "__main__":
    key = jax.random.PRNGKey(0)
    keys = jax.random.split(key, 5)
    # Base case (default alpha=4): C=3, T=8, 16x16 -> n_slow=2.
    _check_case(keys[0], 3, 8, 16, 16, jnp.float32, SLOWFAST_ALPHA)
    # Many small bf16 frames: n_slow=12 > depth=8, exercises steady-state
    # issue/retire loop and non-f32 dtype.
    _check_case(keys[1], 3, 48, 8, 16, jnp.bfloat16, SLOWFAST_ALPHA)
    # n_slow == 1 (single-point linspace) edge case.
    _check_case(keys[2], 2, 4, 8, 16, jnp.float32, SLOWFAST_ALPHA)
    # T < alpha -> empty slow pathway (no kernel launch).
    _check_case(keys[3], 2, 3, 8, 16, jnp.float32, SLOWFAST_ALPHA)
    # Consecutive indices (alpha=1) -> run coalescing (single 4-frame DMA).
    _check_case(keys[4], 2, 4, 8, 16, jnp.float32, 1)
    print("KERNEL_OK")
</pallas_src>

<mosaic_0001>
module attributes {stable_mosaic.version = 11 : i64} {
  func.func @kernel(%arg0: i32, %arg1: memref<3x8x256xf32, #tpu.memory_space<any>>, %arg2: memref<3x2x256xf32, #tpu.memory_space<any>>, %arg3: memref<2x!tpu.dma_semaphore, #tpu.memory_space<semaphore_mem>>) attributes {dimension_semantics = [#tpu.dimension_semantics<arbitrary>], iteration_bounds = array<i64: 1>, scalar_prefetch = 0 : i64, scratch_operands = 1 : i64, tpu.core_type = #tpu.core_type<tc>, window_params = [{}, {}]} {
    %c0_i32 = arith.constant 0 : i32
    %c0_i32_0 = arith.constant 0 : i32
    %c0_i32_1 = arith.constant 0 : i32
    %c0_i32_2 = arith.constant 0 : i32
    %0 = tpu.memref_slice %arg1[%c0_i32_0, %c0_i32_1, %c0_i32_2] : memref<3x8x256xf32, #tpu.memory_space<any>> -> memref<3x1x256xf32, #tpu.memory_space<any>>
    %c0_i32_3 = arith.constant 0 : i32
    %c0_i32_4 = arith.constant 0 : i32
    %c0_i32_5 = arith.constant 0 : i32
    %1 = tpu.memref_slice %arg2[%c0_i32_3, %c0_i32_4, %c0_i32_5] : memref<3x2x256xf32, #tpu.memory_space<any>> -> memref<3x1x256xf32, #tpu.memory_space<any>>
    %2 = tpu.memref_slice %arg3[%c0_i32] : memref<2x!tpu.dma_semaphore, #tpu.memory_space<semaphore_mem>> -> memref<1x!tpu.dma_semaphore, #tpu.memory_space<semaphore_mem>>
    %3 = tpu.memref_squeeze %2 : memref<1x!tpu.dma_semaphore, #tpu.memory_space<semaphore_mem>> -> memref<!tpu.dma_semaphore, #tpu.memory_space<semaphore_mem>>
    tpu.enqueue_dma source(%0 : memref<3x1x256xf32, #tpu.memory_space<any>>) target(%1 : memref<3x1x256xf32, #tpu.memory_space<any>>) target_semaphore(%3 : memref<!tpu.dma_semaphore, #tpu.memory_space<semaphore_mem>>)
    %c1_i32 = arith.constant 1 : i32
    %c0_i32_6 = arith.constant 0 : i32
    %c7_i32 = arith.constant 7 : i32
    %c0_i32_7 = arith.constant 0 : i32
    %4 = tpu.memref_slice %arg1[%c0_i32_6, %c7_i32, %c0_i32_7] : memref<3x8x256xf32, #tpu.memory_space<any>> -> memref<3x1x256xf32, #tpu.memory_space<any>>
    %c0_i32_8 = arith.constant 0 : i32
    %c1_i32_9 = arith.constant 1 : i32
    %c0_i32_10 = arith.constant 0 : i32
    %5 = tpu.memref_slice %arg2[%c0_i32_8, %c1_i32_9, %c0_i32_10] : memref<3x2x256xf32, #tpu.memory_space<any>> -> memref<3x1x256xf32, #tpu.memory_space<any>>
    %6 = tpu.memref_slice %arg3[%c1_i32] : memref<2x!tpu.dma_semaphore, #tpu.memory_space<semaphore_mem>> -> memref<1x!tpu.dma_semaphore, #tpu.memory_space<semaphore_mem>>
    %7 = tpu.memref_squeeze %6 : memref<1x!tpu.dma_semaphore, #tpu.memory_space<semaphore_mem>> -> memref<!tpu.dma_semaphore, #tpu.memory_space<semaphore_mem>>
    tpu.enqueue_dma source(%4 : memref<3x1x256xf32, #tpu.memory_space<any>>) target(%5 : memref<3x1x256xf32, #tpu.memory_space<any>>) target_semaphore(%7 : memref<!tpu.dma_semaphore, #tpu.memory_space<semaphore_mem>>)
    %c0_i32_11 = arith.constant 0 : i32
    %c0_i32_12 = arith.constant 0 : i32
    %c0_i32_13 = arith.constant 0 : i32
    %c0_i32_14 = arith.constant 0 : i32
    %8 = tpu.memref_slice %arg1[%c0_i32_12, %c0_i32_13, %c0_i32_14] : memref<3x8x256xf32, #tpu.memory_space<any>> -> memref<3x1x256xf32, #tpu.memory_space<any>>
    %c0_i32_15 = arith.constant 0 : i32
    %c0_i32_16 = arith.constant 0 : i32
    %c0_i32_17 = arith.constant 0 : i32
    %9 = tpu.memref_slice %arg2[%c0_i32_15, %c0_i32_16, %c0_i32_17] : memref<3x2x256xf32, #tpu.memory_space<any>> -> memref<3x1x256xf32, #tpu.memory_space<any>>
    %10 = tpu.memref_slice %arg3[%c0_i32_11] : memref<2x!tpu.dma_semaphore, #tpu.memory_space<semaphore_mem>> -> memref<1x!tpu.dma_semaphore, #tpu.memory_space<semaphore_mem>>
    %11 = tpu.memref_squeeze %10 : memref<1x!tpu.dma_semaphore, #tpu.memory_space<semaphore_mem>> -> memref<!tpu.dma_semaphore, #tpu.memory_space<semaphore_mem>>
    tpu.wait_dma2 semaphore(%11 : memref<!tpu.dma_semaphore, #tpu.memory_space<semaphore_mem>>) src(%8 : memref<3x1x256xf32, #tpu.memory_space<any>>) dst(%9 : memref<3x1x256xf32, #tpu.memory_space<any>>)
    %c1_i32_18 = arith.constant 1 : i32
    %c0_i32_19 = arith.constant 0 : i32
    %c7_i32_20 = arith.constant 7 : i32
    %c0_i32_21 = arith.constant 0 : i32
    %12 = tpu.memref_slice %arg1[%c0_i32_19, %c7_i32_20, %c0_i32_21] : memref<3x8x256xf32, #tpu.memory_space<any>> -> memref<3x1x256xf32, #tpu.memory_space<any>>
    %c0_i32_22 = arith.constant 0 : i32
    %c1_i32_23 = arith.constant 1 : i32
    %c0_i32_24 = arith.constant 0 : i32
    %13 = tpu.memref_slice %arg2[%c0_i32_22, %c1_i32_23, %c0_i32_24] : memref<3x2x256xf32, #tpu.memory_space<any>> -> memref<3x1x256xf32, #tpu.memory_space<any>>
    %14 = tpu.memref_slice %arg3[%c1_i32_18] : memref<2x!tpu.dma_semaphore, #tpu.memory_space<semaphore_mem>> -> memref<1x!tpu.dma_semaphore, #tpu.memory_space<semaphore_mem>>
    %15 = tpu.memref_squeeze %14 : memref<1x!tpu.dma_semaphore, #tpu.memory_space<semaphore_mem>> -> memref<!tpu.dma_semaphore, #tpu.memory_space<semaphore_mem>>
    tpu.wait_dma2 semaphore(%15 : memref<!tpu.dma_semaphore, #tpu.memory_space<semaphore_mem>>) src(%12 : memref<3x1x256xf32, #tpu.memory_space<any>>) dst(%13 : memref<3x1x256xf32, #tpu.memory_space<any>>)
    return
  }
}

</mosaic_0001>

<bundles_post_ra>
// kernel: tpu_custom_call.1
= control target key start
LH: loop header
LB: loop body
LE: loop exit
PB: predicated region body
PF: predicated region fallthrough
CT: control target
= control target key end

     0   :  { %s80_s6 = smov 128   ;;  %s81_s7 = smov 32   ;;  %s110_s0 = inlined_call_operand.hbm [shape: f32[3,8,256], index: 0, kind: input, shape index: {}]   ;;  %s111_s1 = inlined_call_operand.hbm [shape: f32[3,2,256], index: 1, kind: output, shape index: {}]  }
   0x1   :  { %18 = sst [smem:[#allocation4]] %s80_s6  ;;  %s82_s8 = smov 1  }
   0x2   :  { %20 = sst [smem:[#allocation4 + $0x1]] %s81_s7  ;;  %s25_s11 = scalar_lea.hbm %s110_s0, 112 }
   0x3   :  { %22 = sst [smem:[#allocation4 + $0x2]] %s82_s8  ;;  %s83_s12 = smov [#allocation2]  }
   0x4   :  { %s84_s13 = smov [#allocation3]   ;;  %s85_s14 = smov 0  }
   0x5   :  { %24 = dma.general %s110_s0, 96, %s111_s1, %s83_s12, %s84_s13, [#allocation4], %s85_s14, 0  }
   0x6   :  { %40 = sst [smem:[#allocation6]] %s80_s6  ;;  %s26_s21 = scalar_lea.hbm %s111_s1, 16 }
   0x7   :  { %42 = sst [smem:[#allocation6 + $0x1]] %s81_s7  ;;  %s86_s22 = smov [#allocation2 + $0x1]  }
   0x8   :  { %44 = sst [smem:[#allocation6 + $0x2]] %s82_s8  ;;  %s87_s23 = smov [#allocation5]  }
   0x9   :  { %46 = dma.general %s25_s11, 96, %s26_s21, %s86_s22, %s87_s23, [#allocation6], %s85_s14, 0  }
   0xa   :  { %76 = dma.done.wait [#allocation2], 96 }
   0xb   :  { %77 = vsyncadd [#allocation2], 4294967200 }
   0xc   :  { %78 = dma.done.wait [#allocation2 + $0x1], 96 }
   0xd   :  { %79 = vsyncadd [#allocation2 + $0x1], 4294967200 }
   0xe   :  { %53 = vsyncmov [#allocation2] }
  0x11   :  { %s54_s24 = vpop.sfrf %53 }
  0x12   :  { %p66_p0 = scmp.ne.s32.totalorder %s54_s24, 0 }
  0x14   :  { %58 = shalt.err (%p66_p0)  }
  0x15   :  { %60 = vsyncmov [#allocation2 + $0x1] }
  0x18   :  { %s61_s0 = vpop.sfrf %60 }
  0x19   :  { %p67_p1 = scmp.ne.s32.totalorder %s61_s0, 0 }
  0x1b   :  { %65 = shalt.err (%p67_p1)  }

</bundles_post_ra>
